<compile_context>
chip_gen: v5e
topology: v5e:2x2
jax: 0.10.0
libtpu: 0.0.40
codegen_flags: <defaults>
</compile_context>

<pallas_src>
import functools

import jax
import jax.numpy as jnp
from jax.experimental import pallas as pl
from jax.experimental.pallas import tpu as pltpu
from jax.scipy.linalg import block_diag

OUT_LANES = 128  # lane-dense output width (first 4 lanes carry the 4 tasks)


def separate_mtl_kernel(x_ref, ws_ref, bs_ref, wh_ref, bh_ref, wo_ref, bo_ref,
                        out_ref):
    wdt = ws_ref.dtype

    # Shared trunk: Linear(F, H) + ReLU (f32 accumulation on the MXU).
    x = x_ref[...].astype(wdt)
    h = jnp.dot(x, ws_ref[...], preferred_element_type=jnp.float32) + bs_ref[...]
    h = jnp.maximum(h, 0.0)

    # Fused first layer of all four branches: one (H, 4H) matmul + ReLU.
    a = jnp.dot(h.astype(wdt), wh_ref[...],
                preferred_element_type=jnp.float32) + bh_ref[...]
    a = jnp.maximum(a, 0.0)

    # Fused final projections: block-diagonal (4H, 128) weight (columns 4..127
    # are zero padding) -> dense (tile, 128) store. Each task ends with ReLU.
    o = jnp.dot(a.astype(wdt), wo_ref[...],
                preferred_element_type=jnp.float32) + bo_ref[...]
    o = jnp.maximum(o, 0.0)

    out_ref[...] = o.astype(out_ref.dtype)


def _round_up(a, m):
    return ((a + m - 1) // m) * m


def fuse_params(params, param_dtype=jnp.float32):
    """One-time parameter fusion (run at init, NOT per forward call)."""
    w_s, b_s = params["shared"]
    branches = params["branches"]

    w_h = jnp.concatenate([w1 for (w1, b1, w2, b2) in branches], axis=1)  # (H, 4H)
    b_h = jnp.concatenate([b1 for (w1, b1, w2, b2) in branches], axis=1)  # (1, 4H)
    w_o = block_diag(*[w2 for (w1, b1, w2, b2) in branches])              # (4H, 4)
    b_o = jnp.concatenate([b2 for (w1, b1, w2, b2) in branches], axis=1)  # (1, 4)

    # Pad the head to 128 output lanes so the kernel's store is lane-dense.
    w_o = jnp.pad(w_o, ((0, 0), (0, OUT_LANES - w_o.shape[1])))
    b_o = jnp.pad(b_o, ((0, 0), (0, OUT_LANES - b_o.shape[1])))

    # Weights optionally in bf16 (halves HBM traffic on v6e/v7x); biases f32.
    return (w_s.astype(param_dtype), b_s.astype(jnp.float32),
            w_h.astype(param_dtype), b_h.astype(jnp.float32),
            w_o.astype(param_dtype), b_o.astype(jnp.float32))


@functools.partial(jax.jit, static_argnames=("batch_tile",))
def separate_mtl_forward(x, fused_params, batch_tile=2048):
    """Returns a single (B, 4) array; column t is task t's output."""
    w_s, b_s, w_h, b_h, w_o, b_o = fused_params
    B, F = x.shape
    H = w_s.shape[1]
    OUT = w_o.shape[1]  # 128

    # ---- Batch tiling: sublane-aligned, big tiles, but keep >= 2 grid steps
    # whenever the batch allows it so v7x's two TensorCores both get work. ----
    B8 = _round_up(max(B, 8), 8)
    tile = min(batch_tile, B8)
    if B8 >= 16:
        tile = min(tile, _round_up((B8 + 1) // 2, 8))
    tile = max(8, _round_up(tile, 8))
    B_pad = _round_up(B8, tile)
    x_p = jnp.pad(x, ((0, B_pad - B), (0, 0))) if B_pad != B else x

    grid = (B_pad // tile,)
    x_spec = pl.BlockSpec((tile, F), lambda i: (i, 0))
    param_arrays = [w_s, b_s, w_h, b_h, w_o, b_o]
    # Whole-array blocks with constant index_map => no re-DMA across steps.
    param_specs = [pl.BlockSpec(p.shape, lambda i: (0, 0)) for p in param_arrays]
    out_spec = pl.BlockSpec((tile, OUT), lambda i: (i, 0))

    # ---- VMEM budget: double-buffered x/out tiles + params, plus temporaries.
    param_bytes = sum(int(p.size) * p.dtype.itemsize for p in param_arrays)
    io_bytes = (2 * tile * F * x.dtype.itemsize
                + 2 * tile * OUT * 4
                + 2 * param_bytes)
    tmp_bytes = tile * (H + 4 * H + OUT) * 4
    vmem_limit = int(min(64 << 20, max(16 << 20, 2 * (io_bytes + tmp_bytes))))

    flops = 2 * B_pad * (F * H + H * 4 * H + 4 * H * OUT)
    bytes_accessed = (B_pad * F * x.dtype.itemsize
                      + B_pad * OUT * 4
                      + param_bytes)

    out = pl.pallas_call(
        separate_mtl_kernel,
        out_shape=jax.ShapeDtypeStruct((B_pad, OUT), jnp.float32),
        grid_spec=pltpu.PrefetchScalarGridSpec(
            num_scalar_prefetch=0,
            grid=grid,
            in_specs=[x_spec] + param_specs,
            out_specs=out_spec,
        ),
        compiler_params=pltpu.CompilerParams(
            dimension_semantics=("parallel",),
            vmem_limit_bytes=vmem_limit,
        ),
        cost_estimate=pl.CostEstimate(
            flops=flops, transcendentals=0, bytes_accessed=bytes_accessed),
    )(x_p, *param_arrays)

    return out[:B, :4]


def split_tasks(out):
    """Reproduce the PyTorch module's 4-tuple of (B, 1) task outputs."""
    return out[:, 0:1], out[:, 1:2], out[:, 2:3], out[:, 3:4]


def init_params(key, input_size, hidden_size):
    """Deterministic init. Weights stored as (in, out); biases as (1, out)."""
    def lin(k, din, dout):
        kw, kb = jax.random.split(k)
        w = jax.random.normal(kw, (din, dout), jnp.float32) * 0.1
        b = jax.random.normal(kb, (1, dout), jnp.float32) * 0.01
        return w, b

    ks, k1, k2, k3, k4 = jax.random.split(key, 5)
    shared = lin(ks, input_size, hidden_size)
    branches = []
    for k in (k1, k2, k3, k4):
        ka, kb = jax.random.split(k)
        w1, b1 = lin(ka, hidden_size, hidden_size)
        w2, b2 = lin(kb, hidden_size, 1)
        branches.append((w1, b1, w2, b2))
    return {"shared": shared, "branches": branches}


def reference_forward(x, params):
    """Pure-JAX reference mirroring the PyTorch module."""
    w_s, b_s = params["shared"]
    h = jnp.maximum(x @ w_s + b_s, 0.0)
    outs = []
    for (w1, b1, w2, b2) in params["branches"]:
        a = jnp.maximum(h @ w1 + b1, 0.0)
        o = jnp.maximum(a @ w2 + b2, 0.0)
        outs.append(o)
    return tuple(outs)


if __name__ == "__main__":
    key = jax.random.PRNGKey(0)
    kx, kp = jax.random.split(key)

    B, F, H = 16, 8, 32  # small shapes consistent with the module
    x = jax.random.normal(kx, (B, F), jnp.float32)
    params = init_params(kp, input_size=F, hidden_size=H)

    # Parameter fusion done ONCE at init (hoisted off the forward path).
    fused = fuse_params(params, param_dtype=jnp.float32)

    out = separate_mtl_forward(x, fused)          # (B, 4)
    out = jax.block_until_ready(out)
    outs = split_tasks(out)                       # module-style 4-tuple

    refs = reference_forward(x, params)
    ref_mat = jnp.concatenate(refs, axis=1)
    assert out.shape == (B, 4)
    assert jnp.allclose(out, ref_mat, atol=1e-4, rtol=1e-4), "mismatch vs reference"
    for o, r in zip(outs, refs):
        assert o.shape == (B, 1)
        assert jnp.allclose(o, r, atol=1e-4, rtol=1e-4), "mismatch vs reference"

    print("KERNEL_OK")
</pallas_src>

<mosaic_0001>
module attributes {stable_mosaic.version = 11 : i64} {
  func.func @separate_mtl_kernel(%arg0: i32, %arg1: memref<8x8xf32, #tpu.memory_space<vmem>>, %arg2: memref<8x32xf32, #tpu.memory_space<vmem>>, %arg3: memref<1x32xf32, #tpu.memory_space<vmem>>, %arg4: memref<32x128xf32, #tpu.memory_space<vmem>>, %arg5: memref<1x128xf32, #tpu.memory_space<vmem>>, %arg6: memref<128x128xf32, #tpu.memory_space<vmem>>, %arg7: memref<1x128xf32, #tpu.memory_space<vmem>>, %arg8: memref<8x128xf32, #tpu.memory_space<vmem>>) attributes {dimension_semantics = [#tpu.dimension_semantics<parallel>], iteration_bounds = array<i64: 2>, scalar_prefetch = 0 : i64, scratch_operands = 0 : i64, tpu.core_type = #tpu.core_type<tc>, window_params = [{transform_indices = @transform_0, window_bounds = array<i64: 8, 8>}, {pipeline_mode = #tpu.pipeline_mode<synchronous>, transform_indices = @transform_1, window_bounds = array<i64: 8, 32>}, {pipeline_mode = #tpu.pipeline_mode<synchronous>, transform_indices = @transform_2, window_bounds = array<i64: 1, 32>}, {pipeline_mode = #tpu.pipeline_mode<synchronous>, transform_indices = @transform_3, window_bounds = array<i64: 32, 128>}, {pipeline_mode = #tpu.pipeline_mode<synchronous>, transform_indices = @transform_4, window_bounds = array<i64: 1, 128>}, {pipeline_mode = #tpu.pipeline_mode<synchronous>, transform_indices = @transform_5, window_bounds = array<i64: 128, 128>}, {pipeline_mode = #tpu.pipeline_mode<synchronous>, transform_indices = @transform_6, window_bounds = array<i64: 1, 128>}, {transform_indices = @transform_7, window_bounds = array<i64: 8, 128>}]} {
    %c0 = arith.constant 0 : index
    %c0_0 = arith.constant 0 : index
    %0 = vector.load %arg1[%c0, %c0_0] : memref<8x8xf32, #tpu.memory_space<vmem>>, vector<8x8xf32>
    %c0_1 = arith.constant 0 : index
    %c0_2 = arith.constant 0 : index
    %1 = vector.load %arg2[%c0_1, %c0_2] : memref<8x32xf32, #tpu.memory_space<vmem>>, vector<8x32xf32>
    %cst = arith.constant dense<0.000000e+00> : vector<8x32xf32>
    %2 = tpu.matmul %0, %1, %cst {dimension_numbers = #tpu.dot_dimension_numbers<[1], [0], [0], [1], [0, 0, 1, 1], [], []>} : vector<8x8xf32>, vector<8x32xf32>, vector<8x32xf32> -> vector<8x32xf32>
    %c0_3 = arith.constant 0 : index
    %c0_4 = arith.constant 0 : index
    %3 = vector.load %arg3[%c0_3, %c0_4] : memref<1x32xf32, #tpu.memory_space<vmem>>, vector<1x32xf32>
    %4 = vector.broadcast %3 : vector<1x32xf32> to vector<8x32xf32>
    %5 = arith.addf %2, %4 : vector<8x32xf32>
    %cst_5 = arith.constant 0.000000e+00 : f32
    %6 = vector.broadcast %cst_5 : f32 to vector<8x32xf32>
    %7 = arith.maximumf %5, %6 : vector<8x32xf32>
    %c0_6 = arith.constant 0 : index
    %c0_7 = arith.constant 0 : index
    %8 = vector.load %arg4[%c0_6, %c0_7] : memref<32x128xf32, #tpu.memory_space<vmem>>, vector<32x128xf32>
    %cst_8 = arith.constant dense<0.000000e+00> : vector<8x128xf32>
    %9 = tpu.matmul %7, %8, %cst_8 {dimension_numbers = #tpu.dot_dimension_numbers<[1], [0], [0], [1], [0, 0, 1, 1], [], []>} : vector<8x32xf32>, vector<32x128xf32>, vector<8x128xf32> -> vector<8x128xf32>
    %c0_9 = arith.constant 0 : index
    %c0_10 = arith.constant 0 : index
    %10 = vector.load %arg5[%c0_9, %c0_10] : memref<1x128xf32, #tpu.memory_space<vmem>>, vector<1x128xf32>
    %11 = vector.broadcast %10 : vector<1x128xf32> to vector<8x128xf32>
    %12 = arith.addf %9, %11 : vector<8x128xf32>
    %cst_11 = arith.constant 0.000000e+00 : f32
    %13 = vector.broadcast %cst_11 : f32 to vector<8x128xf32>
    %14 = arith.maximumf %12, %13 : vector<8x128xf32>
    %c0_12 = arith.constant 0 : index
    %c0_13 = arith.constant 0 : index
    %15 = vector.load %arg6[%c0_12, %c0_13] : memref<128x128xf32, #tpu.memory_space<vmem>>, vector<128x128xf32>
    %cst_14 = arith.constant dense<0.000000e+00> : vector<8x128xf32>
    %16 = tpu.matmul %14, %15, %cst_14 {dimension_numbers = #tpu.dot_dimension_numbers<[1], [0], [0], [1], [0, 0, 1, 1], [], []>} : vector<8x128xf32>, vector<128x128xf32>, vector<8x128xf32> -> vector<8x128xf32>
    %c0_15 = arith.constant 0 : index
    %c0_16 = arith.constant 0 : index
    %17 = vector.load %arg7[%c0_15, %c0_16] : memref<1x128xf32, #tpu.memory_space<vmem>>, vector<1x128xf32>
    %18 = vector.broadcast %17 : vector<1x128xf32> to vector<8x128xf32>
    %19 = arith.addf %16, %18 : vector<8x128xf32>
    %cst_17 = arith.constant 0.000000e+00 : f32
    %20 = vector.broadcast %cst_17 : f32 to vector<8x128xf32>
    %21 = arith.maximumf %19, %20 : vector<8x128xf32>
    %c0_18 = arith.constant 0 : index
    %c0_19 = arith.constant 0 : index
    %22 = vector.load %arg8[%c0_18, %c0_19] : memref<8x128xf32, #tpu.memory_space<vmem>>, vector<8x128xf32>
    tpu.vector_store %arg8[%c0_18, %c0_19], %21 {strides = array<i32>} : memref<8x128xf32, #tpu.memory_space<vmem>>, vector<8x128xf32>,
    return
  }
  func.func @transform_0(%arg0: i32) -> (i32, i32) {
    %c0_i32 = arith.constant 0 : i32
    %c0_i32_0 = arith.constant 0 : i32
    return %arg0, %c0_i32 : i32, i32
  }
  func.func @transform_1(%arg0: i32) -> (i32, i32) {
    %c0_i32 = arith.constant 0 : i32
    %c0_i32_0 = arith.constant 0 : i32
    %c0_i32_1 = arith.constant 0 : i32
    return %c0_i32, %c0_i32_0 : i32, i32
  }
  func.func @transform_2(%arg0: i32) -> (i32, i32) {
    %c0_i32 = arith.constant 0 : i32
    %c0_i32_0 = arith.constant 0 : i32
    %c0_i32_1 = arith.constant 0 : i32
    return %c0_i32, %c0_i32_0 : i32, i32
  }
  func.func @transform_3(%arg0: i32) -> (i32, i32) {
    %c0_i32 = arith.constant 0 : i32
    %c0_i32_0 = arith.constant 0 : i32
    %c0_i32_1 = arith.constant 0 : i32
    return %c0_i32, %c0_i32_0 : i32, i32
  }
  func.func @transform_4(%arg0: i32) -> (i32, i32) {
    %c0_i32 = arith.constant 0 : i32
    %c0_i32_0 = arith.constant 0 : i32
    %c0_i32_1 = arith.constant 0 : i32
    return %c0_i32, %c0_i32_0 : i32, i32
  }
  func.func @transform_5(%arg0: i32) -> (i32, i32) {
    %c0_i32 = arith.constant 0 : i32
    %c0_i32_0 = arith.constant 0 : i32
    %c0_i32_1 = arith.constant 0 : i32
    return %c0_i32, %c0_i32_0 : i32, i32
  }
  func.func @transform_6(%arg0: i32) -> (i32, i32) {
    %c0_i32 = arith.constant 0 : i32
    %c0_i32_0 = arith.constant 0 : i32
    %c0_i32_1 = arith.constant 0 : i32
    return %c0_i32, %c0_i32_0 : i32, i32
  }
  func.func @transform_7(%arg0: i32) -> (i32, i32) {
    %c0_i32 = arith.constant 0 : i32
    %c0_i32_0 = arith.constant 0 : i32
    return %arg0, %c0_i32 : i32, i32
  }
}

</mosaic_0001>

<bundles_post_ra>
// kernel: separate_mtl_forward.1
= control target key start
LH: loop header
LB: loop body
LE: loop exit
PB: predicated region body
PF: predicated region fallthrough
CT: control target
= control target key end

     0   :  { %12 = vsyncpa [#allocation3], 0  ;;  %s713_s0 = inlined_call_operand.vmem [shape: f32[16,8], index: 0, kind: input, shape index: {}]   ;;  %s714_s1 = inlined_call_operand.vmem [shape: f32[8,32], index: 1, kind: input, shape index: {}]   ;;  %s715_s2 = inlined_call_operand.vmem [shape: f32[1,32], index: 2, kind: input, shape index: {}]   ;;  %s716_s3 = inlined_call_operand.hbm [shape: f32[32,128], index: 3, kind: input, shape index: {}]   ;;  %s717_s4 = inlined_call_operand.vmem [shape: f32[1,128], index: 4, kind: input, shape index: {}]   ;;  %s718_s5 = inlined_call_operand.hbm [shape: f32[128,128], index: 5, kind: input, shape index: {}]   ;;  %s719_s6 = inlined_call_operand.vmem [shape: f32[1,128], index: 6, kind: input, shape index: {}]   ;;  %s720_s7 = inlined_call_operand.vmem [shape: f32[16,128], index: 7, kind: output, shape index: {}]  }
   0x1   :  { %13 = vsyncpa [#allocation5], 0  ;;  %s658_s24 = smov 0  }
   0x2 LB: > { %s219_s27 = sshll.u32 %s716_s3, 4  ;;  %s489_s28 = sadd.s32 4294967295, %s612_s24   ;;  %s612_s24 = sphi %s658_s24, %s19_s24   ;;  %s220_s27 = int_to_ptr.hbm [resolvable:$true] %s219_s27 }
   0x3   : > { %p491_p0 = scmp.ge.s32.totalorder %s612_s24, 1  ;;  %p202_p1 = scmp.lt.s32.totalorder %s612_s24, 3 }
   0x4   : > { %p519_p2 = scmp.eq.s32.totalorder %s489_s28, 0  ;;  %s614_s30 = smov [#allocation2]  }
   0x5   : > { %p669_p3 = pnand %p491_p0, %p202_p1  ;;  %s221_s8 = sshll.u32 %s614_s30, 4  ;;  %s222_s8 = int_to_ptr.vmem [resolvable:$true] %s221_s8 }
   0x6   : > { %s236_s11 = sshll.u32 %s718_s5, 4  ;;  %s615_s12 = smov [#allocation4]   ;;  %s237_s11 = int_to_ptr.hbm [resolvable:$true] %s236_s11 }
   0x7   : > { %p512_p4 = pneg %p669_p3  ;;  %s238_s13 = sshll.u32 %s615_s12, 4  ;;  %s239_s13 = int_to_ptr.vmem [resolvable:$true] %s238_s13 }
   0x8   : > { %s616_s14 = smov 128   ;;  %s617_s15 = smov 8  }
   0x9   : > { %p513_p5 = pnand %p519_p2, %p512_p4  ;;  %264 = sbr.rel (%p669_p3) target bundleno = 420 (0x1a4), region = 48 }
   0xb   : > { %515 = dma.hbm_to_vmem [thread:$0]  (!%p513_p5), %s220_s27, 512, %s222_s8, [#allocation3], %s616_s14, %s616_s14, %s617_s15  }
   0xc   : > { %518 = dma.hbm_to_vmem [thread:$0]  (!%p513_p5), %s237_s11, 2048, %s239_s13, [#allocation5], %s616_s14, %s616_s14, %s617_s15  }
   0xe   : > { %603 = dma.done.wait (%p519_p2), [#allocation3], 512  }
   0xf   : > { %605 = vsyncadd (%p519_p2), [#allocation3], 4294966784 }
  0x10   : > { %607 = dma.done.wait (%p519_p2), [#allocation5], 2048  }
  0x11   : > { %609 = vsyncadd (%p519_p2), [#allocation5], 4294965248  ;;  %p300_p6 = scmp.lt.s32.totalorder %s489_s28, 1  ;;  %vm314_vm0 = vcmask 64512   ;;  %v309_v0 = vld [vmem:[%s714_s1] sm:$0xff]  ;;  %v342_v2 = vld [vmem:[#allocation2 + $0x18] sm:$0xff] }
  0x12   : > { %333 = vmatpush.msra.mxu0 %v309_v0  ;;  %363 = vmatpush.msra.mxu1 %v342_v2  ;;  %v341_v3 = vld [vmem:[#allocation2 + $0x10] sm:$0xff]  ;;  %v340_v4 = vld [vmem:[#allocation2 + $0x8] sm:$0xff]  ;;  %v339_v5 = vld [vmem:[#allocation2] sm:$0xff]  ;;  %vm347_vm1 = vcmask 261120  }
  0x13   : > { %s723_s28 = smov (!%p300_p6, %s489_s28), 1  ;;  %v387_v6 = vld [vmem:[#allocation4 + $0x78] sm:$0xff]  ;;  %v386_v7 = vld [vmem:[#allocation4 + $0x70] sm:$0xff]  ;;  %v385_v8 = vld [vmem:[#allocation4 + $0x68] sm:$0xff] }
  0x14   : > { %s498_s16 = sshll.u32 %s723_s28, 3  ;;  %364 = vmatpush.msra.mxu1 %v341_v3  ;;  %392 = vmatpush.msra.mxu2 %v387_v6  ;;  %v384_v9 = vld [vmem:[#allocation4 + $0x60] sm:$0xff]  ;;  %v383_v10 = vld [vmem:[#allocation4 + $0x58] sm:$0xff]  ;;  %v382_v11 = vld [vmem:[#allocation4 + $0x50] sm:$0xff] }
  0x15   : > { %s303_s19 = scalar_lea.vmem %s713_s0, %s498_s16  ;;  %v381_v12 = vld [vmem:[#allocation4 + $0x48] sm:$0xff]  ;;  %v380_v13 = vld [vmem:[#allocation4 + $0x40] sm:$0xff]  ;;  %v379_v14 = vld [vmem:[#allocation4 + $0x38] sm:$0xff]  ;;  %s307_s9 = scalar_lea.vmem %s720_s7, %s498_s16 }
  0x16   : > { %v308_v1 = vld [vmem:[%s303_s19] sm:$0xff]  ;;  %365 = vmatpush.msra.mxu1 %v340_v4  ;;  %393 = vmatpush.msra.mxu2 %v386_v7  ;;  %v378_v15 = vld [vmem:[#allocation4 + $0x30] sm:$0xff]  ;;  %v377_v16 = vld [vmem:[#allocation4 + $0x28] sm:$0xff] }
  0x17   : > { %500 = vmatmul.msk.f32.vlgmr.msra.gmra.mxu0 %vm314_vm0, %v308_v1  ;;  %v376_v17 = vld [vmem:[#allocation4 + $0x20] sm:$0xff]  ;;  %v375_v18 = vld [vmem:[#allocation4 + $0x18] sm:$0xff]  ;;  %v374_v23 = vld [vmem:[#allocation4 + $0x10] sm:$0xff] }
  0x18   : > { %366 = vmatpush.msra.mxu1 %v339_v5  ;;  %394 = vmatpush.msra.mxu2 %v385_v8  ;;  %v535_v19 = vld [vmem:[%s715_s2] ss:$0 sm:$0xff]  ;;  %v373_v24 = vld [vmem:[#allocation4 + $0x8] sm:$0xff] }
  0x19   : > { %v372_v25 = vld [vmem:[#allocation4] sm:$0xff] }
  0x1a   : > { %395 = vmatpush.msra.mxu2 %v384_v9  ;;  %v536_v26 = vld [vmem:[%s717_s4] ss:$0 sm:$0xff] }
  0x1b   : > { %v537_v30 = vld [vmem:[%s719_s6] ss:$0 sm:$0xff] }
  0x1c   : > { %396 = vmatpush.msra.mxu2 %v383_v10 }
  0x1e   : > { %397 = vmatpush.msra.mxu2 %v382_v11 }
  0x20   : > { %398 = vmatpush.msra.mxu2 %v381_v12 }
  0x22   : > { %399 = vmatpush.msra.mxu2 %v380_v13 }
  0x24   : > { %400 = vmatpush.msra.mxu2 %v379_v14 }
  0x26   : > { %401 = vmatpush.msra.mxu2 %v378_v15 }
  0x28   : > { %402 = vmatpush.msra.mxu2 %v377_v16 }
  0x2a   : > { %403 = vmatpush.msra.mxu2 %v376_v17 }
  0x2c   : > { %404 = vmatpush.msra.mxu2 %v375_v18 }
  0x2e   : > { %405 = vmatpush.msra.mxu2 %v374_v23 }
  0x30   : > { %406 = vmatpush.msra.mxu2 %v373_v24 }
  0x32   : > { %407 = vmatpush.msra.mxu2 %v372_v25 }
  0x94   : > { %v335_v20 = vpop.f32.mrf.mxu0 }
  0x95   : > { %v336_v21 = vadd.f32 %v535_v19, %v335_v20 }
  0x97   : > { %v338_v22 = vmax.f32 %v336_v21, 0.0 }
  0x99   : > { %501 = vmatmul.msk.f32.vlgmr.msra.gmra.mxu1 %vm347_vm1, %v338_v22 }
 0x116   : > { %v368_v27 = vpop.f32.mrf.mxu1 }
 0x117   : > { %v369_v28 = vadd.f32 %v536_v26, %v368_v27 }
 0x119   : > { %v371_v29 = vmax.f32 %v369_v28, 0.0 }
 0x11b   : > { %408 = vmatmul.f32.vlgmr.msra.gmra.mxu2 %v371_v29 }
 0x19e   : > { %v409_v31 = vpop.f32.mrf.mxu2 }
 0x19f   : > { %v410_v32 = vadd.f32 %v537_v30, %v409_v31 }
 0x1a1   : > { %v412_v33 = vmax.f32 %v410_v32, 0.0 }
 0x1a3   : > { %413 = vst [vmem:[%s307_s9] sm:$0xff] %v412_v33 }
 0x1a4 PF: > { %s19_s24 = sadd.s32 1, %s612_s24  }
 0x1a5   : > { %p16_p7 = scmp.ge.s32.totalorder %s19_s24, 4  }
 0x1a7   :  { %18 = sbr.rel (!%p16_p7) target bundleno = 2 (0x2), region = 87 }
 0x1ac   :  { %433 = vsyncpa [#allocation3], 1 }
 0x1ad   :  { %435 = vsyncpa [#allocation3 + $0x1], 1 }
 0x1ae   :  { %436 = vsyncpa [#allocation5], 1 }

</bundles_post_ra>
